<compile_context>
chip_gen: v6e
topology: v6e:2x2x1
jax: 0.10.0
libtpu: 0.0.40
codegen_flags: <defaults>
</compile_context>

<pallas_src>
import jax
import jax.numpy as jnp
from jax.experimental import pallas as pl
from jax.experimental.pallas import tpu as pltpu


def _round_up(x, m):
    return ((x + m - 1) // m) * m


# ----------------------------- kernels ---------------------------------------

def _spk_bios_kernel(sid_ref, bios_ref, w_ref, base_ref, diff_ref, o_ref):
    # f32 bios block comes straight from HBM; cast to bf16 on the VPU and feed
    # the MXU with f32 accumulation (kernel is HBM-bound, compute slots idle).
    bios = bios_ref[...].astype(w_ref.dtype)
    proj = jnp.dot(bios, w_ref[...], preferred_element_type=jnp.float32)
    # Speaker "lookup" as a single FMA against precomputed constants:
    #   out = proj + (b + emb[0]) + sid * (emb[1] - emb[0])
    # Valid because speaker_id ∈ {0, 1} per the module contract.
    sid = sid_ref[...].astype(jnp.float32)
    o_ref[...] = (proj + base_ref[...] + sid * diff_ref[...]).astype(o_ref.dtype)


def _spk_only_kernel(sid_ref, base_ref, diff_ref, o_ref):
    sid = sid_ref[...].astype(jnp.float32)
    o_ref[...] = (base_ref[...] + sid * diff_ref[...]).astype(o_ref.dtype)


# --------------------- param prep (once per parameter set) --------------------

def prepare_speaker_bios_params(params, *, compute_dtype=jnp.bfloat16):
    """Hoist the W transpose / casts / embedding base+diff out of the hot path."""
    emb = params["emb"].astype(jnp.float32)              # (2, model_dim)
    b = params["b"].astype(jnp.float32)                  # (model_dim,)
    model_dim = emb.shape[1]
    Wt = params["W"].T.astype(compute_dtype)             # (bios_dim, model_dim)
    return {
        "Wt": Wt,
        "base_spk": emb[0].reshape(1, model_dim),            # emb-only path
        "base_bios": (emb[0] + b).reshape(1, model_dim),      # bios path: emb[0] + bias
        "diff": (emb[1] - emb[0]).reshape(1, model_dim),
        "model_dim": model_dim,
        "bios_dim": Wt.shape[0],
        "compute_dtype": compute_dtype,
    }


# ----------------------------- tile sizing ------------------------------------

_VMEM_BUDGET_BYTES = 20 << 20   # conservative vs the 32 MiB scoped default (v7x)


def _bios_vmem_bytes(tile_n, bios_dim, model_dim, out_itemsize):
    # Double-buffered pipelined blocks + resident weight + small vectors.
    return (2 * tile_n * bios_dim * 4                 # bios tile (f32)
            + 2 * tile_n * 128 * 4                    # sid tile (lane-padded to 128)
            + 2 * tile_n * model_dim * out_itemsize   # output tile
            + 2 * bios_dim * model_dim * 2            # bf16 weight
            + 4 * 8 * model_dim * 4)                  # base/diff (sublane-padded)


def _pick_tile_n(tile_n, n_rows, bios_dim, model_dim, out_itemsize):
    # Multiple of 16 (bf16 sublane packing); capped so the grid keeps >= ~4
    # steps for large N (both v7x TensorCores share the "parallel" axis);
    # shrunk until the double-buffered footprint fits the VMEM budget.
    tile_n = max(16, _round_up(int(tile_n), 16))
    tile_n = min(tile_n, max(16, _round_up(pl.cdiv(n_rows, 4), 16)))
    while tile_n > 16 and _bios_vmem_bytes(
            tile_n, bios_dim, model_dim, out_itemsize) > _VMEM_BUDGET_BYTES:
        tile_n = max(16, _round_up(tile_n // 2, 16))
    return tile_n


# ----------------------------- wrapper ----------------------------------------

def speaker_bios_embedding(speaker_id, bios_embedding, prepared, *,
                           tile_n=1024, out_dtype=jnp.float32):
    """
    speaker_id:      (B, T) integer array with values in {0, 1}
    bios_embedding:  (B, T, bios_dim) float array, or None
    prepared:        output of prepare_speaker_bios_params()
    returns:         (B, T, model_dim) array of dtype `out_dtype`
    """
    B, T = speaker_id.shape
    N = B * T
    model_dim = prepared["model_dim"]
    out_itemsize = jnp.dtype(out_dtype).itemsize

    # sid stays int32 in HBM (tiny stream); the fp cast happens on the VPU.
    sid = speaker_id.reshape(N, 1).astype(jnp.int32)

    if bios_embedding is None:
        tn = _pick_tile_n(tile_n, N, 0, model_dim, out_itemsize)
        grid = (pl.cdiv(N, tn),)            # partial last block handled by Pallas
        cost = pl.CostEstimate(
            flops=2 * N * model_dim,
            transcendentals=0,
            bytes_accessed=int(N * 4 + N * model_dim * out_itemsize
                               + 2 * model_dim * 4),
        )
        out = pl.pallas_call(
            _spk_only_kernel,
            out_shape=jax.ShapeDtypeStruct((N, model_dim), out_dtype),
            grid_spec=pltpu.PrefetchScalarGridSpec(
                num_scalar_prefetch=0,
                grid=grid,
                in_specs=[
                    pl.BlockSpec((tn, 1), lambda i: (i, 0)),          # sid (int32)
                    pl.BlockSpec((1, model_dim), lambda i: (0, 0)),   # emb[0]
                    pl.BlockSpec((1, model_dim), lambda i: (0, 0)),   # emb[1]-emb[0]
                ],
                out_specs=pl.BlockSpec((tn, model_dim), lambda i: (i, 0)),
            ),
            compiler_params=pltpu.CompilerParams(
                dimension_semantics=("parallel",)),
            cost_estimate=cost,
        )(sid, prepared["base_spk"], prepared["diff"])
        return out.reshape(B, T, model_dim)

    bios_dim = prepared["bios_dim"]
    # No wrapper-side pad/astype: the kernel reads the f32 bios directly and
    # casts on-chip (saves an extra full HBM pass over the dominant stream).
    bios = bios_embedding.reshape(N, bios_dim)
    bios_itemsize = jnp.dtype(bios.dtype).itemsize

    tn = _pick_tile_n(tile_n, N, bios_dim, model_dim, out_itemsize)
    grid = (pl.cdiv(N, tn),)                # partial last block handled by Pallas

    footprint = _bios_vmem_bytes(tn, bios_dim, model_dim, out_itemsize)
    vmem_limit = int(min(48 << 20, max(32 << 20, 2 * footprint)))

    cost = pl.CostEstimate(
        flops=2 * N * bios_dim * model_dim,
        transcendentals=0,
        bytes_accessed=int(
            N * bios_dim * bios_itemsize          # bios read (f32)
            + N * model_dim * out_itemsize        # output write
            + N * 4                               # sid read
            + bios_dim * model_dim * 2            # bf16 weight (resident)
            + 2 * model_dim * 4),                 # base + diff
    )

    out = pl.pallas_call(
        _spk_bios_kernel,
        out_shape=jax.ShapeDtypeStruct((N, model_dim), out_dtype),
        grid_spec=pltpu.PrefetchScalarGridSpec(
            num_scalar_prefetch=0,
            grid=grid,
            in_specs=[
                pl.BlockSpec((tn, 1), lambda i: (i, 0)),               # sid (int32)
                pl.BlockSpec((tn, bios_dim), lambda i: (i, 0)),        # bios tile (f32)
                pl.BlockSpec((bios_dim, model_dim), lambda i: (0, 0)), # resident bf16 weight
                pl.BlockSpec((1, model_dim), lambda i: (0, 0)),        # b + emb[0]
                pl.BlockSpec((1, model_dim), lambda i: (0, 0)),        # emb[1]-emb[0]
            ],
            out_specs=pl.BlockSpec((tn, model_dim), lambda i: (i, 0)),
        ),
        compiler_params=pltpu.CompilerParams(
            dimension_semantics=("parallel",),
            vmem_limit_bytes=vmem_limit),
        cost_estimate=cost,
    )(sid, bios, prepared["Wt"], prepared["base_bios"], prepared["diff"])
    return out.reshape(B, T, model_dim)


# ----------------------------- reference / main --------------------------------

def _reference(speaker_id, bios_embedding, params):
    spk = params["emb"][speaker_id]                                   # (B, T, D)
    if bios_embedding is None:
        return spk
    proj = jnp.einsum("btf,df->btd", bios_embedding, params["W"]) + params["b"]
    return spk + proj


if __name__ == "__main__":
    key = jax.random.PRNGKey(0)
    k_emb, k_w, k_b, k_sid, k_bios, k_sid2, k_bios2 = jax.random.split(key, 7)

    bios_dim, model_dim = 768, 128
    params = {
        "emb": jax.random.normal(k_emb, (2, model_dim), dtype=jnp.float32),
        "W": jax.random.normal(k_w, (model_dim, bios_dim), dtype=jnp.float32)
             * (1.0 / jnp.sqrt(bios_dim)),
        "b": jax.random.normal(k_b, (model_dim,), dtype=jnp.float32) * 0.01,
    }
    prepared = prepare_speaker_bios_params(params)

    # --- case 1: tiny, tile-aligned (B=2, T=8) --------------------------------
    B, T = 2, 8
    speaker_id = jax.random.randint(k_sid, (B, T), 0, 2, dtype=jnp.int32)
    bios = jax.random.normal(k_bios, (B, T, bios_dim), dtype=jnp.float32)

    out = jax.block_until_ready(speaker_bios_embedding(speaker_id, bios, prepared))
    ref = _reference(speaker_id, bios, params)
    assert out.shape == (B, T, model_dim)
    assert jnp.allclose(out, ref, atol=5e-2, rtol=5e-2), "bios path mismatch"

    out_e = jax.block_until_ready(speaker_bios_embedding(speaker_id, None, prepared))
    ref_e = _reference(speaker_id, None, params)
    assert jnp.allclose(out_e, ref_e, atol=1e-5, rtol=1e-5), "embed-only path mismatch"

    # --- case 2: N not a tile multiple (exercises the masked partial last block)
    B2, T2 = 3, 50                               # N = 150 -> tile 48, grid of 4
    speaker_id2 = jax.random.randint(k_sid2, (B2, T2), 0, 2, dtype=jnp.int32)
    bios2 = jax.random.normal(k_bios2, (B2, T2, bios_dim), dtype=jnp.float32)

    out2 = jax.block_until_ready(speaker_bios_embedding(speaker_id2, bios2, prepared))
    ref2 = _reference(speaker_id2, bios2, params)
    assert out2.shape == (B2, T2, model_dim)
    assert jnp.allclose(out2, ref2, atol=5e-2, rtol=5e-2), "ragged bios path mismatch"

    out2_e = jax.block_until_ready(speaker_bios_embedding(speaker_id2, None, prepared))
    ref2_e = _reference(speaker_id2, None, params)
    assert jnp.allclose(out2_e, ref2_e, atol=1e-5, rtol=1e-5), "ragged embed-only mismatch"

    print("KERNEL_OK")
</pallas_src>

<mosaic_0001>
module attributes {stable_mosaic.version = 11 : i64} {
  func.func @_spk_bios_kernel(%arg0: i32, %arg1: memref<16x1xi32, #tpu.memory_space<vmem>>, %arg2: memref<16x768xf32, #tpu.memory_space<vmem>>, %arg3: memref<768x128xbf16, #tpu.memory_space<vmem>>, %arg4: memref<1x128xf32, #tpu.memory_space<vmem>>, %arg5: memref<1x128xf32, #tpu.memory_space<vmem>>, %arg6: memref<16x128xf32, #tpu.memory_space<vmem>>) attributes {dimension_semantics = [#tpu.dimension_semantics<parallel>], iteration_bounds = array<i64: 1>, scalar_prefetch = 0 : i64, scratch_operands = 0 : i64, tpu.core_type = #tpu.core_type<tc>, window_params = [{transform_indices = @transform_0, window_bounds = array<i64: 16, 1>}, {transform_indices = @transform_1, window_bounds = array<i64: 16, 768>}, {pipeline_mode = #tpu.pipeline_mode<synchronous>, transform_indices = @transform_2, window_bounds = array<i64: 768, 128>}, {pipeline_mode = #tpu.pipeline_mode<synchronous>, transform_indices = @transform_3, window_bounds = array<i64: 1, 128>}, {pipeline_mode = #tpu.pipeline_mode<synchronous>, transform_indices = @transform_4, window_bounds = array<i64: 1, 128>}, {transform_indices = @transform_5, window_bounds = array<i64: 16, 128>}]} {
    %c0 = arith.constant 0 : index
    %c0_0 = arith.constant 0 : index
    %0 = vector.load %arg2[%c0, %c0_0] : memref<16x768xf32, #tpu.memory_space<vmem>>, vector<16x768xf32>
    %1 = arith.truncf %0 : vector<16x768xf32> to vector<16x768xbf16>
    %c0_1 = arith.constant 0 : index
    %c0_2 = arith.constant 0 : index
    %2 = vector.load %arg3[%c0_1, %c0_2] : memref<768x128xbf16, #tpu.memory_space<vmem>>, vector<768x128xbf16>
    %cst = arith.constant dense<0.000000e+00> : vector<16x128xf32>
    %3 = tpu.matmul %1, %2, %cst {dimension_numbers = #tpu.dot_dimension_numbers<[1], [0], [0], [1], [0, 0, 1, 1], [], []>} : vector<16x768xbf16>, vector<768x128xbf16>, vector<16x128xf32> -> vector<16x128xf32>
    %c0_3 = arith.constant 0 : index
    %c0_4 = arith.constant 0 : index
    %4 = vector.load %arg1[%c0_3, %c0_4] : memref<16x1xi32, #tpu.memory_space<vmem>>, vector<16x1xi32>
    %5 = arith.sitofp %4 : vector<16x1xi32> to vector<16x1xf32>
    %c0_5 = arith.constant 0 : index
    %c0_6 = arith.constant 0 : index
    %6 = vector.load %arg4[%c0_5, %c0_6] : memref<1x128xf32, #tpu.memory_space<vmem>>, vector<1x128xf32>
    %7 = vector.broadcast %6 : vector<1x128xf32> to vector<16x128xf32>
    %8 = arith.addf %3, %7 : vector<16x128xf32>
    %c0_7 = arith.constant 0 : index
    %c0_8 = arith.constant 0 : index
    %9 = vector.load %arg5[%c0_7, %c0_8] : memref<1x128xf32, #tpu.memory_space<vmem>>, vector<1x128xf32>
    %10 = vector.broadcast %5 : vector<16x1xf32> to vector<16x128xf32>
    %11 = vector.broadcast %9 : vector<1x128xf32> to vector<16x128xf32>
    %12 = arith.mulf %10, %11 : vector<16x128xf32>
    %13 = arith.addf %8, %12 : vector<16x128xf32>
    %c0_9 = arith.constant 0 : index
    %c0_10 = arith.constant 0 : index
    %14 = vector.load %arg6[%c0_9, %c0_10] : memref<16x128xf32, #tpu.memory_space<vmem>>, vector<16x128xf32>
    tpu.vector_store %arg6[%c0_9, %c0_10], %13 {strides = array<i32>} : memref<16x128xf32, #tpu.memory_space<vmem>>, vector<16x128xf32>,
    return
  }
  func.func @transform_0(%arg0: i32) -> (i32, i32) {
    %c0_i32 = arith.constant 0 : i32
    %c0_i32_0 = arith.constant 0 : i32
    return %arg0, %c0_i32 : i32, i32
  }
  func.func @transform_1(%arg0: i32) -> (i32, i32) {
    %c0_i32 = arith.constant 0 : i32
    %c0_i32_0 = arith.constant 0 : i32
    return %arg0, %c0_i32 : i32, i32
  }
  func.func @transform_2(%arg0: i32) -> (i32, i32) {
    %c0_i32 = arith.constant 0 : i32
    %c0_i32_0 = arith.constant 0 : i32
    %c0_i32_1 = arith.constant 0 : i32
    return %c0_i32, %c0_i32_0 : i32, i32
  }
  func.func @transform_3(%arg0: i32) -> (i32, i32) {
    %c0_i32 = arith.constant 0 : i32
    %c0_i32_0 = arith.constant 0 : i32
    %c0_i32_1 = arith.constant 0 : i32
    return %c0_i32, %c0_i32_0 : i32, i32
  }
  func.func @transform_4(%arg0: i32) -> (i32, i32) {
    %c0_i32 = arith.constant 0 : i32
    %c0_i32_0 = arith.constant 0 : i32
    %c0_i32_1 = arith.constant 0 : i32
    return %c0_i32, %c0_i32_0 : i32, i32
  }
  func.func @transform_5(%arg0: i32) -> (i32, i32) {
    %c0_i32 = arith.constant 0 : i32
    %c0_i32_0 = arith.constant 0 : i32
    return %arg0, %c0_i32 : i32, i32
  }
}

</mosaic_0001>

<bundles_post_ra>
// kernel: tpu_custom_call.1
= control target key start
LH: loop header
LB: loop body
LE: loop exit
PB: predicated region body
PF: predicated region fallthrough
CT: control target
= control target key end

     0   :  { %10 = vsyncpa [#allocation3], 0  ;;  %s929_s0 = inlined_call_operand.vmem [shape: s32[16,1], index: 0, kind: input, shape index: {}]   ;;  %s930_s1 = inlined_call_operand.hbm [shape: f32[16,768], index: 1, kind: input, shape index: {}]   ;;  %s931_s2 = inlined_call_operand.hbm [shape: bf16[768,128], index: 2, kind: input, shape index: {}]   ;;  %s932_s3 = inlined_call_operand.vmem [shape: f32[1,128], index: 3, kind: input, shape index: {}]   ;;  %s933_s4 = inlined_call_operand.vmem [shape: f32[1,128], index: 4, kind: input, shape index: {}]   ;;  %s934_s5 = inlined_call_operand.hbm [shape: f32[16,128], index: 5, kind: output, shape index: {}]  }
   0x1   :  { %11 = vsyncpa [#allocation6], 0 }
   0x2   :  { %12 = vsyncpa [#allocation4], 0  ;;  %s868_s18 = smov [#allocation2]  }
   0x3   :  { %s20_s19 = sshll.u32 %s868_s18, 4  ;;  %s21_s19 = int_to_ptr.vmem [resolvable:$true] %s20_s19 }
   0x4   :  { %s810_s20 = scalar_lea.vmem %s21_s19, 1536  ;;  %p815_p1 = scmp.lt.s32.totalorder %s21_s19, %s21_s19 }
   0x5   :  { %p811_p0 = scmp.ne.s32.totalorder %s21_s19, %s810_s20  ;;  %p816_p2 = scmp.lt.s32.totalorder %s810_s20, %s810_s20 }
   0x7   :  { %p817_p3 = por %p816_p2, %p815_p1 }
   0x9   :  { %p818_p4 = pnand %p817_p3, %p811_p0 }
   0xb   :  { %821 = shalt.err (!%p818_p4)
}
   0xc   :  { %s869_s21 = smov 768   ;;  %s870_s22 = smov 48  }
   0xd   :  { %26 = dma.hbm_to_vmem [thread:$0]  %s930_s1, 1536, %s21_s19, [#allocation3], %s869_s21, %s869_s21, %s870_s22  }
   0xe   :  { %s871_s25 = smov [#allocation5]  }
   0xf   :  { %s32_s26 = sshll.u32 %s871_s25, 4  ;;  %s33_s26 = int_to_ptr.vmem [resolvable:$true] %s32_s26 }
  0x10   :  { %s830_s27 = scalar_lea.vmem %s33_s26, 6144  ;;  %p835_p6 = scmp.lt.s32.totalorder %s33_s26, %s33_s26 }
  0x11   :  { %p831_p5 = scmp.ne.s32.totalorder %s33_s26, %s830_s27  ;;  %p836_p7 = scmp.lt.s32.totalorder %s830_s27, %s830_s27 }
  0x13   :  { %p837_p8 = por %p836_p7, %p835_p6 }
  0x15   :  { %p838_p9 = pnand %p837_p8, %p831_p5 }
  0x17   :  { %841 = shalt.err (!%p838_p9)
}
  0x18   :  { %s872_s28 = smov 64   ;;  %s873_s29 = smov 4  }
  0x19   :  { %38 = dma.hbm_to_vmem [thread:$0]  %s931_s2, 6144, %s33_s26, [#allocation6], %s872_s28, %s872_s28, %s873_s29  }
  0x1a   :  { %862 = dma.done.wait [#allocation3], 1536  }
  0x1b   :  { %863 = vsyncadd [#allocation3], 4294965760 }
  0x1c   :  { %864 = dma.done.wait [#allocation6], 6144  }
  0x1d   :  { %865 = vsyncadd [#allocation6], 4294961152  ;;  %v874_v0 = vmov 0   ;;  %v754_v1 = vld [vmem:[#allocation5 + $0x78] sm:$0xff]   ;;  %v758_v5 = vld [vmem:[#allocation5 + $0x70] sm:$0xff]  }
  0x1e   :  { %753 = vset.pattern.permute.xlu0 %v874_v0  ;;  %v755_v2 = vld [vmem:[#allocation5 + $0x38] sm:$0xff]   ;;  %677 = vmatprep.subr.bf16.mxu0 %v754_v1  ;;  %v759_v6 = vld [vmem:[#allocation5 + $0x30] sm:$0xff]   ;;  %v762_v9 = vld [vmem:[#allocation5 + $0x68] sm:$0xff]  }
  0x1f   :  { %v756_v3 = vld [vmem:[#allocation5 + $0xf8] sm:$0xff]   ;;  %678 = vmatpush3.bf16.msra.mxu0 %v755_v2  ;;  %v760_v7 = vld [vmem:[#allocation5 + $0xf0] sm:$0xff]   ;;  %v763_v10 = vld [vmem:[#allocation5 + $0x28] sm:$0xff]  }
  0x20   :  { %v757_v4 = vld [vmem:[#allocation5 + $0xb8] sm:$0xff]   ;;  %699 = vmatprep.subr.bf16.mxu1 %v756_v3  ;;  %679 = vmatprep.subr.bf16.mxu0 %v758_v5  ;;  %v761_v8 = vld [vmem:[#allocation5 + $0xb0] sm:$0xff]   ;;  %v764_v11 = vld [vmem:[#allocation5 + $0xe8] sm:$0xff]  }
  0x21   :  { %700 = vmatpush3.bf16.msra.mxu1 %v757_v4  ;;  %v765_v12 = vld [vmem:[#allocation5 + $0xa8] sm:$0xff]   ;;  %v766_v13 = vld [vmem:[#allocation5 + $0x60] sm:$0xff]   ;;  %v770_v17 = vld [vmem:[#allocation5 + $0x58] sm:$0xff]  }
  0x22   :  { %701 = vmatprep.subr.bf16.mxu1 %v760_v7  ;;  %v767_v14 = vld [vmem:[#allocation5 + $0x20] sm:$0xff]   ;;  %v771_v18 = vld [vmem:[#allocation5 + $0x18] sm:$0xff]   ;;  %v774_v21 = vld [vmem:[#allocation5 + $0x50] sm:$0xff]  }
  0x23   :  { %680 = vmatpush3.bf16.msra.mxu0 %v759_v6  ;;  %v768_v15 = vld [vmem:[#allocation5 + $0xe0] sm:$0xff]   ;;  %v772_v19 = vld [vmem:[#allocation5 + $0xd8] sm:$0xff]   ;;  %v775_v22 = vld [vmem:[#allocation5 + $0x10] sm:$0xff]  }
  0x24   :  { %681 = vmatprep.subr.bf16.mxu0 %v762_v9  ;;  %v769_v16 = vld [vmem:[#allocation5 + $0xa0] sm:$0xff]   ;;  %v773_v20 = vld [vmem:[#allocation5 + $0x98] sm:$0xff]   ;;  %v776_v23 = vld [vmem:[#allocation5 + $0xd0] sm:$0xff]  }
  0x25   :  { %702 = vmatpush3.bf16.msra.mxu1 %v761_v8  ;;  %v777_v24 = vld [vmem:[#allocation5 + $0x90] sm:$0xff]   ;;  %v778_v25 = vld [vmem:[#allocation5 + $0x48] sm:$0xff]   ;;  %v782_v29 = vld [vmem:[#allocation5 + $0x40] sm:$0xff]  }
  0x26   :  { %703 = vmatprep.subr.bf16.mxu1 %v764_v11  ;;  %v779_v26 = vld [vmem:[#allocation5 + $0x8] sm:$0xff]   ;;  %v783_v30 = vld [vmem:[#allocation5] sm:$0xff]   ;;  %v57_v33 = vld [vmem:[#allocation2 + $0x38] sm:$0xff] }
  0x27   :  { %682 = vmatpush3.bf16.msra.mxu0 %v763_v10  ;;  %v780_v27 = vld [vmem:[#allocation5 + $0xc8] sm:$0xff]   ;;  %v784_v31 = vld [vmem:[#allocation5 + $0xc0] sm:$0xff]   ;;  %v56_v37 = vld [vmem:[#allocation2 + $0x30] sm:$0xff] }
  0x28   :  { %683 = vmatprep.subr.bf16.mxu0 %v766_v13  ;;  %v781_v28 = vld [vmem:[#allocation5 + $0x88] sm:$0xff]   ;;  %v785_v35 = vld [vmem:[#allocation5 + $0x80] sm:$0xff]   ;;  %v786_v39 = vld [vmem:[#allocation5 + $0x178] sm:$0xff]  }
  0x29   :  { %704 = vmatpush3.bf16.msra.mxu1 %v765_v12  ;;  %v51_v32 = vld [vmem:[#allocation2 + $0x8] sm:$0xff]  ;;  %v50_v36 = vld [vmem:[#allocation2] sm:$0xff]  ;;  %v53_v40 = vld [vmem:[#allocation2 + $0x18] sm:$0xff] }
  0x2a   :  { %705 = vmatprep.subr.bf16.mxu1 %v768_v15  ;;  %v63_v34 = vpack.c.bf16 %v57_v33, %v51_v32  ;;  %v62_v38 = vpack.c.bf16 %v56_v37, %v50_v36  ;;  %v59_v41 = vld [vmem:[#allocation2 + $0x48] sm:$0xff]  ;;  %v787_v43 = vld [vmem:[#allocation5 + $0x138] sm:$0xff]   ;;  %v52_v44 = vld [vmem:[#allocation2 + $0x10] sm:$0xff] }
  0x2b   :  { %684 = vmatpush3.bf16.msra.mxu0 %v767_v14  ;;  %v65_v42 = vpack.c.bf16 %v59_v41, %v53_v40  ;;  %v58_v45 = vld [vmem:[#allocation2 + $0x40] sm:$0xff]  ;;  %v788_v47 = vld [vmem:[#allocation5 + $0x170] sm:$0xff]   ;;  %v790_v49 = vld [vmem:[#allocation5 + $0x168] sm:$0xff]  }
  0x2c   :  { %685 = vmatprep.subr.bf16.mxu0 %v770_v17  ;;  %495 = vmatprep.mubr.bf16.mxu0 %v63_v34  ;;  %v64_v46 = vpack.c.bf16 %v58_v45, %v52_v44  ;;  %v789_v48 = vld [vmem:[#allocation5 + $0x130] sm:$0xff]   ;;  %v791_v50 = vld [vmem:[#allocation5 + $0x128] sm:$0xff]   ;;  %v792_v51 = vld [vmem:[#allocation5 + $0x160] sm:$0xff]  }
  0x2d   :  { %706 = vmatpush3.bf16.msra.mxu1 %v769_v16  ;;  %536 = vmatprep.mubr.bf16.mxu1 %v65_v42  ;;  %v793_v52 = vld [vmem:[#allocation5 + $0x120] sm:$0xff]   ;;  %v794_v53 = vld [vmem:[#allocation5 + $0x158] sm:$0xff]   ;;  %v796_v55 = vld [vmem:[#allocation5 + $0x150] sm:$0xff]  }
  0x2e   :  { %707 = vmatprep.subr.bf16.mxu1 %v772_v19  ;;  %v795_v54 = vld [vmem:[#allocation5 + $0x118] sm:$0xff]   ;;  %v55_v56 = vld [vmem:[#allocation2 + $0x28] sm:$0xff]  ;;  %v164_v59 = vld [vmem:[%s929_s0] sm:$0xff] }
  0x2f   :  { %686 = vmatpush3.bf16.msra.mxu0 %v771_v18  ;;  %v61_v57 = vld [vmem:[#allocation2 + $0x58] sm:$0xff]  ;;  %v165_v60 = vld [vmem:[%s929_s0 + $0x8] sm:$0xff]  ;;  %v797_v61 = vld [vmem:[#allocation5 + $0x110] sm:$0xff]   ;;  %v166_v62 = vcvt.s32.f32 %v164_v59 }
  0x30   :  { %687 = vmatprep.subr.bf16.mxu0 %v774_v21  ;;  %v67_v58 = vpack.c.bf16 %v61_v57, %v55_v56  ;;  %v798_v63 = vld [vmem:[#allocation5 + $0x148] sm:$0xff]   ;;  %v167_v0 = vcvt.s32.f32 %v165_v60  ;;  %v800_v2 = vld [vmem:[#allocation5 + $0x140] sm:$0xff]   ;;  %v60_v5 = vld [vmem:[#allocation2 + $0x50] sm:$0xff] }
  0x31   :  { %708 = vmatpush3.bf16.msra.mxu1 %v773_v20  ;;  %589 = vperm.xlu0 %753, %v166_v62   ;;  %v799_v1 = vld [vmem:[#allocation5 + $0x108] sm:$0xff]   ;;  %v801_v3 = vld [vmem:[#allocation5 + $0x100] sm:$0xff]  }
  0x32   :  { %709 = vmatprep.subr.bf16.mxu1 %v776_v23  ;;  %v54_v4 = vld [vmem:[#allocation2 + $0x20] sm:$0xff] }
  0x33   :  { %688 = vmatpush3.bf16.msra.mxu0 %v775_v22  ;;  %v66_v6 = vpack.c.bf16 %v60_v5, %v54_v4  ;;  %v627_v13 = vld [vmem:[%s932_s3] ss:$0 sm:$0xff]  ;;  %s875_s3 = smov [#allocation7]  }
  0x34   :  { %689 = vmatprep.subr.bf16.mxu0 %v778_v25  ;;  %v676_v19 = vld [vmem:[%s933_s4] ss:$0 sm:$0xff]  ;;  %s614_s12 = sshll.u32 %s875_s3, 4  ;;  %s615_s12 = int_to_ptr.vmem [resolvable:$true] %s614_s12 }
  0x35   :  { %710 = vmatpush3.bf16.msra.mxu1 %v777_v24  ;;  %594 = vperm.xlu0 %753, %v167_v0   ;;  %s842_s4 = scalar_lea.vmem %s615_s12, 256  ;;  %p847_p11 = scmp.lt.s32.totalorder %s615_s12, %s615_s12 }
  0x36   :  { %711 = vmatprep.subr.bf16.mxu1 %v780_v27  ;;  %p843_p10 = scmp.ne.s32.totalorder %s615_s12, %s842_s4  ;;  %p848_p12 = scmp.lt.s32.totalorder %s842_s4, %s842_s4 }
  0x37   :  { %690 = vmatpush3.bf16.msra.mxu0 %v779_v26 }
  0x38   :  { %691 = vmatprep.subr.bf16.mxu0 %v782_v29  ;;  %p849_p13 = por %p848_p12, %p847_p11 }
  0x39   :  { %712 = vmatpush3.bf16.msra.mxu1 %v781_v28 }
  0x3a   :  { %713 = vmatprep.subr.bf16.mxu1 %v784_v31  ;;  %p850_p0 = pnand %p849_p13, %p843_p10 }
  0x3b   :  { %692 = vmatpush3.bf16.msra.mxu0 %v783_v30 }
  0x3c   :  { %721 = vmatprep.subr.bf16.mxu0 %v786_v39 }
  0x3d   :  { %714 = vmatpush3.bf16.msra.mxu1 %v785_v35 }
  0x3e   :  { %496 = vmatmul.mubr.bf16.vlgmr.msra.gmra.mxu0 %v62_v38 }
  0x3f   :  { %722 = vmatpush3.bf16.msra.mxu0 %v787_v43  ;;  %577 = vmatprep.mubr.bf16.mxu0 %v67_v58 }
  0x40   :  { %537 = vmatmul.mubr.bf16.vlgmr.msra.gmra.mxu1 %v64_v46  ;;  %723 = vmatprep.subr.bf16.mxu0 %v788_v47 }
  0x43   :  { %724 = vmatpush3.bf16.msra.mxu0 %v789_v48 }
  0x44   :  { %725 = vmatprep.subr.bf16.mxu0 %v790_v49 }
  0x47   :  { %726 = vmatpush3.bf16.msra.mxu0 %v791_v50 }
  0x48   :  { %727 = vmatprep.subr.bf16.mxu0 %v792_v51 }
  0x4b   :  { %728 = vmatpush3.bf16.msra.mxu0 %v793_v52 }
  0x4c   :  { %729 = vmatprep.subr.bf16.mxu0 %v794_v53 }
  0x4f   :  { %730 = vmatpush3.bf16.msra.mxu0 %v795_v54 }
  0x50   :  { %731 = vmatprep.subr.bf16.mxu0 %v796_v55 }
  0x53   :  { %732 = vmatpush3.bf16.msra.mxu0 %v797_v61 }
  0x54   :  { %733 = vmatprep.subr.bf16.mxu0 %v798_v63 }
  0x57   :  { %734 = vmatpush3.bf16.msra.mxu0 %v799_v1 }
  0x58   :  { %735 = vmatprep.subr.bf16.mxu0 %v800_v2 }
  0x5b   :  { %736 = vmatpush3.bf16.msra.mxu0 %v801_v3 }
  0x5e   :  { %578 = vmatmul.mubr.bf16.vlgmr.msra.gmra.mxu0 %v66_v6 }
  0xac   :  { %v590_v20 = vpop.permute.xlu0 %589 }
  0xad   :  { %v603_v23 = vmul.f32 %v676_v19, %v590_v20 }
  0xb0   :  { %v595_v31 = vpop.permute.xlu0 %594 }
  0xb1   :  { %v604_v36 = vmul.f32 %v676_v19, %v595_v31 }
  0xfe   :  { %v693_v7 = vpop.f32.mrf.mxu0 }
 0x100   :  { %v694_v8 = vpop.f32.mrf.mxu0  ;;  %v715_v9 = vpop.f32.mrf.mxu1 }
 0x101   :  { %v695_v12 = vadd.f32 %v694_v8, %v693_v7 }
 0x102   :  { %v696_v10 = vpop.f32.mrf.mxu0  ;;  %v716_v11 = vpop.f32.mrf.mxu1 }
 0x103   :  { %v498_v16 = vadd.f32 %v695_v12, %v627_v13  ;;  %v717_v17 = vadd.f32 %v716_v11, %v715_v9 }
 0x104   :  { %v697_v14 = vpop.f32.mrf.mxu0  ;;  %v718_v15 = vpop.f32.mrf.mxu1 }
 0x105   :  { %v698_v18 = vadd.f32 %v697_v14, %v696_v10  ;;  %v539_v25 = vadd.f32 %v717_v17, %v498_v16 }
 0x106   :  { %v719_v21 = vpop.f32.mrf.mxu1 }
 0x107   :  { %v501_v26 = vadd.f32 %v698_v18, %v627_v13  ;;  %v720_v27 = vadd.f32 %v719_v21, %v718_v15 }
 0x109   :  { %v542_v33 = vadd.f32 %v720_v27, %v501_v26 }
 0x11e   :  { %v737_v22 = vpop.f32.mrf.mxu0 }
 0x120   :  { %v738_v24 = vpop.f32.mrf.mxu0 }
 0x121   :  { %v739_v28 = vadd.f32 %v738_v24, %v737_v22 }
 0x122   :  { %v740_v29 = vpop.f32.mrf.mxu0 }
 0x123   :  { %v580_v30 = vadd.f32 %v739_v28, %v539_v25 }
 0x124   :  { %v741_v32 = vpop.f32.mrf.mxu0 }
 0x125   :  { %v605_v34 = vadd.f32 %v603_v23, %v580_v30  ;;  %v742_v35 = vadd.f32 %v741_v32, %v740_v29 }
 0x127   :  { %607 = vst [vmem:[#allocation7] sm:$0xff] %v605_v34  ;;  %v583_v37 = vadd.f32 %v742_v35, %v542_v33 }
 0x129   :  { %v606_v38 = vadd.f32 %v604_v36, %v583_v37 }
 0x12b   :  { %608 = vst [vmem:[#allocation7 + $0x8] sm:$0xff] %v606_v38 }
 0x12c   :  { %853 = shalt.err (!%p850_p0)
}
 0x12d   :  { %s876_s13 = smov 128   ;;  %s877_s14 = smov 8  }
 0x12e   :  { %620 = dma.vmem_to_hbm [thread:$0]  %s615_s12, 256, %s934_s5, [#allocation4], %s876_s13, %s876_s13, %s877_s14  }
 0x12f   :  { %866 = dma.done.wait [#allocation4], 256  }
 0x130   :  { %867 = vsyncadd [#allocation4], 4294967040 }
 0x131   :  { %624 = vsyncpa [#allocation3], 1 }
 0x132   :  { %625 = vsyncpa [#allocation6], 1 }
 0x133   :  { %626 = vsyncpa [#allocation4], 1 }

</bundles_post_ra>
